<compile_context>
chip_gen: v5e
topology: v5e:2x2
jax: 0.10.0
libtpu: 0.0.40
codegen_flags: <defaults>
</compile_context>

<pallas_src>
import jax
import jax.numpy as jnp
from jax.experimental import pallas as pl
from jax.experimental.pallas import tpu as pltpu


def _round_up(n, m):
    return ((n + m - 1) // m) * m


# ---------------------------------------------------------------------------
# Kernel: one (tile_m, N) output slab (resident path) or (tile_m, tile_n)
# tile (fallback).  Inverse norms arrive precomputed with 1/temp folded into
# the x-side factor, so the epilogue is two broadcast multiplies + a cast.
# ---------------------------------------------------------------------------
def _sim_kernel(x_ref, yt_ref, ixn_ref, iyn_ref, o_ref):
    dots = jnp.dot(x_ref[...], yt_ref[...],
                   preferred_element_type=jnp.float32)         # MXU, f32 acc
    o_ref[...] = (dots * ixn_ref[...] * iyn_ref[...]).astype(o_ref.dtype)


def similarity(x, y, temp, eps=1e-8, tile_m_cap=256, tile_n_cap=256):
    """Pallas equivalent of SimCSE Similarity(temp)(x, y).

    x: (B, 1, H)  (z1.unsqueeze(1))
    y: (1, B, H)  (z2.unsqueeze(0))
    returns: (B, B) cosine similarities divided by temp (dtype == x.dtype).
    """
    assert x.ndim == 3 and y.ndim == 3
    assert x.shape[1] == 1 and y.shape[0] == 1
    assert x.shape[2] == y.shape[2]
    bx, _, h = x.shape
    _, by, _ = y.shape

    x2 = x.reshape(bx, h)
    y2 = y.reshape(by, h)

    in_item = jnp.dtype(x2.dtype).itemsize
    out_item = jnp.dtype(x.dtype).itemsize
    sublane = {4: 8, 2: 16, 1: 32}.get(in_item, 8)

    inv_temp = 1.0 / float(temp)
    eps = float(eps)

    # ---- Prologue (plain XLA, O(B*H)): exact f32 inverse norms, 1/temp
    # folded into the x-side factor.  Per-norm clamp at sqrt(eps) matches
    # PyTorch's max(||x||*||y||, eps) unless one norm is < 1e-4.
    eps_n = eps ** 0.5
    xf = x2.astype(jnp.float32)
    yf = y2.astype(jnp.float32)
    inv_xn = inv_temp / jnp.maximum(
        jnp.sqrt(jnp.sum(xf * xf, axis=-1, keepdims=True)), eps_n)   # (bx,1)
    inv_yn = 1.0 / jnp.maximum(
        jnp.sqrt(jnp.sum(yf * yf, axis=-1, keepdims=True)), eps_n)   # (by,1)

    # ---- Layout / tiling decisions ----------------------------------------
    h_pad = _round_up(h, 128)
    by_pad0 = _round_up(by, 128)                 # lane axis of the output

    # Row tiling: aim for >= 2 row blocks so both v7x TensorCores get work.
    rows = _round_up(bx, sublane)
    if rows >= 2 * sublane:
        tile_m = min(tile_m_cap, _round_up(-(-rows // 2), sublane))
    else:
        tile_m = rows
    bx_pad = _round_up(bx, tile_m)

    vmem_cap = 48 * 1024 * 1024          # headroom under v7x's 64 MiB physical
    resident_budget = 40 * 1024 * 1024

    # Conservative footprint if y^T stays VMEM-resident (2 buffers assumed).
    resident_bytes = (2 * tile_m * h_pad * in_item          # x tile (dbl-buf)
                      + 2 * h_pad * by_pad0 * in_item       # resident y^T
                      + 2 * tile_m * by_pad0 * out_item     # output slab
                      + 2 * (tile_m + by_pad0) * 4)         # inverse norms

    resident = resident_bytes <= resident_budget
    if resident:
        by_pad = by_pad0
        tile_n = by_pad
        est_bytes = resident_bytes
    else:
        tile_n = min(tile_n_cap, by_pad0)        # multiple of 128
        by_pad = _round_up(by, tile_n)
        est_bytes = (2 * tile_m * h_pad * in_item
                     + 2 * h_pad * tile_n * in_item
                     + 2 * tile_m * tile_n * out_item
                     + 2 * (tile_m + tile_n) * 4)
    vmem_limit = int(min(max(est_bytes + (8 << 20), 32 << 20), vmem_cap))

    # ---- Pad only when needed; pre-transpose y once (O(B*H)) so the kernel
    # uses a standard (M,K)x(K,N) contraction (no per-tile XLU transposes).
    xp = x2 if (bx_pad, h_pad) == (bx, h) else jnp.pad(
        x2, ((0, bx_pad - bx), (0, h_pad - h)))
    yp = y2 if (by_pad, h_pad) == (by, h) else jnp.pad(
        y2, ((0, by_pad - by), (0, h_pad - h)))
    yt = yp.T                                               # (h_pad, by_pad)

    ixn = inv_xn if bx_pad == bx else jnp.pad(inv_xn, ((0, bx_pad - bx), (0, 0)))
    iyn = inv_yn if by_pad == by else jnp.pad(inv_yn, ((0, by_pad - by), (0, 0)))
    iyn_t = iyn.reshape(1, by_pad)

    # ---- Grid / specs -------------------------------------------------------
    grid_m = bx_pad // tile_m
    if resident:
        grid = (grid_m,)
        in_specs = [
            pl.BlockSpec((tile_m, h_pad), lambda i: (i, 0)),     # x rows
            pl.BlockSpec((h_pad, by_pad), lambda i: (0, 0)),     # y^T, resident
            pl.BlockSpec((tile_m, 1), lambda i: (i, 0)),         # 1/(temp*||x||)
            pl.BlockSpec((1, by_pad), lambda i: (0, 0)),         # 1/||y||
        ]
        out_specs = pl.BlockSpec((tile_m, by_pad), lambda i: (i, 0))
        dims = ("parallel",)
        y_reads = 1
    else:
        # Fallback: 2-D output tiling, y^T streamed per column tile.
        # TODO(synk): for very large H add an innermost "arbitrary" K grid
        # axis with an f32 VMEM accumulator instead of whole-H blocks.
        grid = (grid_m, by_pad // tile_n)
        in_specs = [
            pl.BlockSpec((tile_m, h_pad), lambda i, j: (i, 0)),
            pl.BlockSpec((h_pad, tile_n), lambda i, j: (0, j)),
            pl.BlockSpec((tile_m, 1), lambda i, j: (i, 0)),
            pl.BlockSpec((1, tile_n), lambda i, j: (0, j)),
        ]
        out_specs = pl.BlockSpec((tile_m, tile_n), lambda i, j: (i, j))
        dims = ("parallel", "parallel")
        y_reads = grid_m

    cost = pl.CostEstimate(
        flops=2 * bx_pad * by_pad * h_pad,
        transcendentals=0,
        bytes_accessed=(bx_pad * h_pad + y_reads * by_pad * h_pad) * in_item
        + bx_pad * by_pad * out_item + (bx_pad + by_pad) * 4,
    )

    out = pl.pallas_call(
        _sim_kernel,
        out_shape=jax.ShapeDtypeStruct((bx_pad, by_pad), x.dtype),
        grid=grid,
        in_specs=in_specs,
        out_specs=out_specs,
        compiler_params=pltpu.CompilerParams(
            dimension_semantics=dims,
            vmem_limit_bytes=vmem_limit,
        ),
        cost_estimate=cost,
    )(xp, yt, ixn, iyn_t)

    return out[:bx, :by]


if __name__ == "__main__":
    B, H = 8, 32
    temp = 0.05  # SimCSE default temperature

    key = jax.random.PRNGKey(0)
    kx, ky = jax.random.split(key)
    z1 = jax.random.normal(kx, (B, H), dtype=jnp.float32)
    z2 = jax.random.normal(ky, (B, H), dtype=jnp.float32)

    # Mirror the PyTorch call: sim(z1.unsqueeze(1), z2.unsqueeze(0))
    x = z1[:, None, :]   # (B, 1, H)
    y = z2[None, :, :]   # (1, B, H)

    out = similarity(x, y, temp)
    out = jax.block_until_ready(out)

    # Reference (same formula as torch.nn.CosineSimilarity / temp).
    dots = z1 @ z2.T
    ref = dots / jnp.maximum(
        jnp.linalg.norm(z1, axis=-1, keepdims=True)
        * jnp.linalg.norm(z2, axis=-1, keepdims=True).T,
        1e-8,
    ) / temp

    assert out.shape == (B, B)
    # Exact f32 reciprocals in the prologue -> tight tolerance.
    assert jnp.allclose(out, ref, atol=1e-3, rtol=1e-3), (
        float(jnp.max(jnp.abs(out - ref))))

    print("KERNEL_OK")
</pallas_src>

<mosaic_0001>
module attributes {stable_mosaic.version = 11 : i64} {
  func.func @_sim_kernel(%arg0: i32, %arg1: memref<8x128xf32, #tpu.memory_space<vmem>>, %arg2: memref<128x128xf32, #tpu.memory_space<vmem>>, %arg3: memref<8x1xf32, #tpu.memory_space<vmem>>, %arg4: memref<1x128xf32, #tpu.memory_space<vmem>>, %arg5: memref<8x128xf32, #tpu.memory_space<vmem>>) attributes {dimension_semantics = [#tpu.dimension_semantics<parallel>], iteration_bounds = array<i64: 1>, scalar_prefetch = 0 : i64, scratch_operands = 0 : i64, tpu.core_type = #tpu.core_type<tc>, window_params = [{transform_indices = @transform_0, window_bounds = array<i64: 8, 128>}, {pipeline_mode = #tpu.pipeline_mode<synchronous>, transform_indices = @transform_1, window_bounds = array<i64: 128, 128>}, {transform_indices = @transform_2, window_bounds = array<i64: 8, 1>}, {pipeline_mode = #tpu.pipeline_mode<synchronous>, transform_indices = @transform_3, window_bounds = array<i64: 1, 128>}, {transform_indices = @transform_4, window_bounds = array<i64: 8, 128>}]} {
    %c0 = arith.constant 0 : index
    %c0_0 = arith.constant 0 : index
    %0 = vector.load %arg1[%c0, %c0_0] : memref<8x128xf32, #tpu.memory_space<vmem>>, vector<8x128xf32>
    %c0_1 = arith.constant 0 : index
    %c0_2 = arith.constant 0 : index
    %1 = vector.load %arg2[%c0_1, %c0_2] : memref<128x128xf32, #tpu.memory_space<vmem>>, vector<128x128xf32>
    %cst = arith.constant dense<0.000000e+00> : vector<8x128xf32>
    %2 = tpu.matmul %0, %1, %cst {dimension_numbers = #tpu.dot_dimension_numbers<[1], [0], [0], [1], [0, 0, 1, 1], [], []>} : vector<8x128xf32>, vector<128x128xf32>, vector<8x128xf32> -> vector<8x128xf32>
    %c0_3 = arith.constant 0 : index
    %c0_4 = arith.constant 0 : index
    %3 = vector.load %arg3[%c0_3, %c0_4] : memref<8x1xf32, #tpu.memory_space<vmem>>, vector<8x1xf32>
    %4 = vector.broadcast %3 : vector<8x1xf32> to vector<8x128xf32>
    %5 = arith.mulf %2, %4 : vector<8x128xf32>
    %c0_5 = arith.constant 0 : index
    %c0_6 = arith.constant 0 : index
    %6 = vector.load %arg4[%c0_5, %c0_6] : memref<1x128xf32, #tpu.memory_space<vmem>>, vector<1x128xf32>
    %7 = vector.broadcast %6 : vector<1x128xf32> to vector<8x128xf32>
    %8 = arith.mulf %5, %7 : vector<8x128xf32>
    %c0_7 = arith.constant 0 : index
    %c0_8 = arith.constant 0 : index
    %9 = vector.load %arg5[%c0_7, %c0_8] : memref<8x128xf32, #tpu.memory_space<vmem>>, vector<8x128xf32>
    tpu.vector_store %arg5[%c0_7, %c0_8], %8 {strides = array<i32>} : memref<8x128xf32, #tpu.memory_space<vmem>>, vector<8x128xf32>,
    return
  }
  func.func @transform_0(%arg0: i32) -> (i32, i32) {
    %c0_i32 = arith.constant 0 : i32
    %c0_i32_0 = arith.constant 0 : i32
    return %arg0, %c0_i32 : i32, i32
  }
  func.func @transform_1(%arg0: i32) -> (i32, i32) {
    %c0_i32 = arith.constant 0 : i32
    %c0_i32_0 = arith.constant 0 : i32
    %c0_i32_1 = arith.constant 0 : i32
    return %c0_i32, %c0_i32_0 : i32, i32
  }
  func.func @transform_2(%arg0: i32) -> (i32, i32) {
    %c0_i32 = arith.constant 0 : i32
    %c0_i32_0 = arith.constant 0 : i32
    return %arg0, %c0_i32 : i32, i32
  }
  func.func @transform_3(%arg0: i32) -> (i32, i32) {
    %c0_i32 = arith.constant 0 : i32
    %c0_i32_0 = arith.constant 0 : i32
    %c0_i32_1 = arith.constant 0 : i32
    return %c0_i32, %c0_i32_0 : i32, i32
  }
  func.func @transform_4(%arg0: i32) -> (i32, i32) {
    %c0_i32 = arith.constant 0 : i32
    %c0_i32_0 = arith.constant 0 : i32
    return %arg0, %c0_i32 : i32, i32
  }
}

</mosaic_0001>

<bundles_post_ra>
// kernel: tpu_custom_call.1
= control target key start
LH: loop header
LB: loop body
LE: loop exit
PB: predicated region body
PF: predicated region fallthrough
CT: control target
= control target key end

     0   :  { %9 = vsyncpa [#allocation3], 0  ;;  %s205_s0 = inlined_call_operand.vmem [shape: f32[8,128], index: 0, kind: input, shape index: {}]   ;;  %s206_s1 = inlined_call_operand.hbm [shape: f32[128,128], index: 1, kind: input, shape index: {}]   ;;  %s207_s2 = inlined_call_operand.vmem [shape: f32[8,1], index: 2, kind: input, shape index: {}]   ;;  %s208_s3 = inlined_call_operand.vmem [shape: f32[1,128], index: 3, kind: input, shape index: {}]   ;;  %s209_s4 = inlined_call_operand.hbm [shape: f32[8,128], index: 4, kind: output, shape index: {}]  }
   0x1   :  { %10 = vsyncpa [#allocation4], 0  ;;  %s17_s17 = sshll.u32 %s206_s1, 4  ;;  %s160_s18 = smov [#allocation2]   ;;  %s18_s17 = int_to_ptr.hbm [resolvable:$true] %s17_s17 }
   0x2   :  { %s19_s19 = sshll.u32 %s160_s18, 4  ;;  %s161_s20 = smov 128   ;;  %s20_s19 = int_to_ptr.vmem [resolvable:$true] %s19_s19 }
   0x3   :  { %s162_s21 = smov 8  }
   0x4   :  { %25 = dma.hbm_to_vmem [thread:$0]  %s18_s17, 2048, %s20_s19, [#allocation3], %s161_s20, %s161_s20, %s162_s21  }
   0x5   :  { %156 = dma.done.wait [#allocation3], 2048  }
   0x6   :  { %157 = vsyncadd [#allocation3], 4294965248  ;;  %v50_v0 = vld [vmem:[#allocation2 + $0x78] sm:$0xff]  ;;  %v49_v1 = vld [vmem:[#allocation2 + $0x70] sm:$0xff]  ;;  %v163_v2 = vmov 0   ;;  %s164_s26 = smov [#allocation5]  }
   0x7   :  { %51 = vmatpush.msra.mxu0 %v50_v0  ;;  %106 = vset.pattern.permute.xlu0 %v163_v2  ;;  %v48_v3 = vld [vmem:[#allocation2 + $0x68] sm:$0xff]  ;;  %v47_v4 = vld [vmem:[#allocation2 + $0x60] sm:$0xff]  ;;  %v46_v6 = vld [vmem:[#allocation2 + $0x58] sm:$0xff]  ;;  %s89_s27 = sshll.u32 %s164_s26, 4  ;;  %s91_s30 = sshll.u32 %s209_s4, 4  ;;  %s90_s27 = int_to_ptr.vmem [resolvable:$true] %s89_s27  ;;  %s92_s30 = int_to_ptr.hbm [resolvable:$true] %s91_s30 }
   0x8   :  { %v71_v5 = vld [vmem:[%s207_s2] sm:$0xff]  ;;  %v45_v7 = vld [vmem:[#allocation2 + $0x50] sm:$0xff]  ;;  %v44_v8 = vld [vmem:[#allocation2 + $0x48] sm:$0xff] }
   0x9   :  { %52 = vmatpush.msra.mxu0 %v49_v1  ;;  %74 = vperm.xlu0 %106, %v71_v5   ;;  %v43_v9 = vld [vmem:[#allocation2 + $0x40] sm:$0xff]  ;;  %v42_v10 = vld [vmem:[#allocation2 + $0x38] sm:$0xff]  ;;  %v41_v11 = vld [vmem:[#allocation2 + $0x30] sm:$0xff] }
   0xa   :  { %v40_v12 = vld [vmem:[#allocation2 + $0x28] sm:$0xff]  ;;  %v39_v13 = vld [vmem:[#allocation2 + $0x20] sm:$0xff]  ;;  %v38_v14 = vld [vmem:[#allocation2 + $0x18] sm:$0xff] }
   0xb   :  { %53 = vmatpush.msra.mxu0 %v48_v3  ;;  %v37_v15 = vld [vmem:[#allocation2 + $0x10] sm:$0xff]  ;;  %v36_v16 = vld [vmem:[#allocation2 + $0x8] sm:$0xff]  ;;  %v35_v17 = vld [vmem:[#allocation2] sm:$0xff] }
   0xc   :  { %v34_v18 = vld [vmem:[%s205_s0] sm:$0xff] }
   0xd   :  { %54 = vmatpush.msra.mxu0 %v47_v4  ;;  %v107_v20 = vld [vmem:[%s208_s3] ss:$0 sm:$0xff] }
   0xf   :  { %55 = vmatpush.msra.mxu0 %v46_v6 }
  0x11   :  { %56 = vmatpush.msra.mxu0 %v45_v7 }
  0x13   :  { %57 = vmatpush.msra.mxu0 %v44_v8 }
  0x15   :  { %58 = vmatpush.msra.mxu0 %v43_v9 }
  0x17   :  { %59 = vmatpush.msra.mxu0 %v42_v10 }
  0x19   :  { %60 = vmatpush.msra.mxu0 %v41_v11 }
  0x1b   :  { %61 = vmatpush.msra.mxu0 %v40_v12 }
  0x1d   :  { %62 = vmatpush.msra.mxu0 %v39_v13 }
  0x1f   :  { %63 = vmatpush.msra.mxu0 %v38_v14 }
  0x21   :  { %64 = vmatpush.msra.mxu0 %v37_v15 }
  0x23   :  { %65 = vmatpush.msra.mxu0 %v36_v16 }
  0x25   :  { %66 = vmatpush.msra.mxu0 %v35_v17 }
  0x26   :  { %67 = vmatmul.f32.vlgmr.msra.gmra.mxu0 %v34_v18 }
  0x7b   :  { %v75_v19 = vpop.permute.xlu0 %74 }
  0xa3   :  { %v68_v21 = vpop.f32.mrf.mxu0 }
  0xa4   :  { %v77_v22 = vmul.f32 %v75_v19, %v68_v21 }
  0xa6   :  { %v82_v23 = vmul.f32 %v107_v20, %v77_v22 }
  0xa8   :  { %83 = vst [vmem:[#allocation5] sm:$0xff] %v82_v23 }
  0xa9   :  { %94 = dma.vmem_to_hbm [thread:$0]  %s90_s27, 128, %s92_s30, [#allocation4]  }
  0xaa   :  { %158 = dma.done.wait [#allocation4], 128  }
  0xab   :  { %159 = vsyncadd [#allocation4], 4294967168 }
  0xac   :  { %99 = vsyncpa [#allocation3], 1 }
  0xad   :  { %100 = vsyncpa [#allocation4], 1 }

</bundles_post_ra>
